<compile_context>
chip_gen: v7x
topology: tpu7x:2x2x1
jax: 0.10.0
libtpu: 0.0.40
codegen_flags: <defaults>
</compile_context>

<pallas_src>
import functools

import jax
import jax.numpy as jnp
from jax.experimental import pallas as pl
from jax.experimental.pallas import tpu as pltpu


def channel_attention_kernel(x_ref, w1t_ref, b1_ref, w2t_ref, b2_ref, out_ref,
                             sum_acc, max_acc, pooled_acc,
                             *, hw, t_hw, bt, n_hw):
    # x_ref     : (Bt, C, T_HW)  lane-dense slice of Bt batch elements
    # w1t_ref   : (C, I)  fc1 weight pre-transposed;  b1_ref: (1, I)
    # w2t_ref   : (I, C)  fc2 weight pre-transposed;  b2_ref: (1, C)
    # out_ref   : (1, Bt, C)
    # sum_acc, max_acc : (Bt, C) f32 scratch (resident across the HW grid axis)
    # pooled_acc       : (2*Bt, C) f32 scratch used only on the final step
    j = pl.program_id(1)
    x = x_ref[...]                                    # (Bt, C, T_HW)

    def mlp_and_store(avg, mx):
        # Fused avg/max branches, lane-dense: pooled is (2*Bt, C), so both MXU
        # results are full-lane-width (no narrow writes, no transposes).
        pooled_acc[0:bt, :] = avg
        pooled_acc[bt:2 * bt, :] = mx
        pooled = pooled_acc[...]                                       # (2Bt, C)
        h = jnp.dot(pooled, w1t_ref[...],
                    preferred_element_type=jnp.float32) + b1_ref[...]  # (2Bt, I)
        h = jnp.maximum(h, 0.0)                                        # ReLU
        o = jnp.dot(h, w2t_ref[...],
                    preferred_element_type=jnp.float32) + b2_ref[...]  # (2Bt, C)
        o = jax.nn.sigmoid(o)
        out_ref[0] = o[0:bt, :] + o[bt:2 * bt, :]                      # (Bt, C)

    if n_hw == 1:
        # Whole H*W extent in one block: no accumulators, no masking, no when.
        mlp_and_store(jnp.sum(x, axis=-1) * (1.0 / hw), jnp.max(x, axis=-1))
        return

    def accumulate(part_sum, part_max):
        @pl.when(j == 0)
        def _init():
            sum_acc[...] = part_sum
            max_acc[...] = part_max

        @pl.when(j > 0)
        def _update():
            sum_acc[...] = sum_acc[...] + part_sum
            max_acc[...] = jnp.maximum(max_acc[...], part_max)

    if hw % t_hw != 0:
        # Only the final tile can be partial -> pay the OOB mask only there.
        @pl.when(j < n_hw - 1)
        def _full_tiles():
            accumulate(jnp.sum(x, axis=-1), jnp.max(x, axis=-1))

        @pl.when(j == n_hw - 1)
        def _partial_tile():
            col = jax.lax.broadcasted_iota(jnp.int32, x.shape, 2)
            valid = (j * t_hw + col) < hw
            accumulate(jnp.sum(jnp.where(valid, x, 0.0), axis=-1),
                       jnp.max(jnp.where(valid, x, -jnp.inf), axis=-1))
    else:
        accumulate(jnp.sum(x, axis=-1), jnp.max(x, axis=-1))

    @pl.when(j == n_hw - 1)
    def _finalize():
        mlp_and_store(sum_acc[...] * (1.0 / hw), max_acc[...])


def _vmem_capacity_bytes():
    try:
        cap = getattr(pltpu.get_tpu_info(), "vmem_capacity_bytes", None)
        if cap:
            return int(cap)
    except Exception:
        pass
    return 64 * 1024 * 1024  # conservative default (v7x per-TC VMEM)


def _plan(B, C, HW, itemsize=4):
    """Pick (Bt, T_HW, vmem_limit) from the per-generation VMEM budget."""
    cap = _vmem_capacity_bytes()
    # Scoped-VMEM limit: ~70% of physical, capped at 96 MiB.
    #   v5e/v6e (128 MiB physical) -> ~90 MiB;  v7x (64 MiB) -> ~45 MiB.
    vmem_limit = min(int(cap * 0.7), 96 * 1024 * 1024)
    # x is double-buffered by the pipeline and is by far the largest operand;
    # give its two buffers ~half the limit (rest: weights, accums, headroom).
    per_buffer = (vmem_limit // 2) // 2
    row_bytes = C * HW * itemsize

    if row_bytes <= per_buffer:
        # Whole H*W reduction fits in one step: pack batch elements instead.
        t_hw = HW
        bt = 1
        bt_cap = min(B, max(1, per_buffer // max(row_bytes, 1)))
        for d in range(bt_cap, 0, -1):
            if B % d == 0:
                bt = d
                break
    else:
        bt = 1
        t_hw = (per_buffer // (C * itemsize)) // 128 * 128
        t_hw = max(t_hw, 128)
        if t_hw > HW:
            t_hw = HW
    return bt, t_hw, vmem_limit


def channel_attention(x, w1, b1, w2, b2, *, bt=None, t_hw=None):
    """x: (B, C, H, W) f32; w1: (I, C); b1: (I,); w2: (C, I); b2: (C,).
    Returns (B, C, 1, 1) f32 (matches the torch module's view)."""
    B, C, H, W = x.shape
    I = w1.shape[0]
    HW = H * W

    auto_bt, auto_t_hw, vmem_limit = _plan(B, C, HW, jnp.dtype(x.dtype).itemsize)
    if bt is None:
        bt = auto_bt
    if t_hw is None:
        t_hw = auto_t_hw
    assert B % bt == 0, "bt must divide B"
    assert t_hw == HW or t_hw % 128 == 0, \
        "t_hw must be a multiple of 128 or the full H*W extent"
    n_hw = -(-HW // t_hw)

    # Free view: reduction axis becomes the lane axis.
    x_flat = x.reshape(B, C, HW)
    w1t = jnp.transpose(w1)           # (C, I)
    w2t = jnp.transpose(w2)           # (I, C)
    b1_row = b1.reshape(1, I)
    b2_row = b2.reshape(1, C)

    kernel = functools.partial(channel_attention_kernel,
                               hw=HW, t_hw=t_hw, bt=bt, n_hw=n_hw)

    out = pl.pallas_call(
        kernel,
        out_shape=jax.ShapeDtypeStruct((B // bt, bt, C), jnp.float32),
        grid_spec=pltpu.PrefetchScalarGridSpec(
            num_scalar_prefetch=0,
            grid=(B // bt, n_hw),
            in_specs=[
                pl.BlockSpec((bt, C, t_hw), lambda b, j: (b, 0, j)),
                pl.BlockSpec((C, I), lambda b, j: (0, 0)),
                pl.BlockSpec((1, I), lambda b, j: (0, 0)),
                pl.BlockSpec((I, C), lambda b, j: (0, 0)),
                pl.BlockSpec((1, C), lambda b, j: (0, 0)),
            ],
            out_specs=pl.BlockSpec((1, bt, C), lambda b, j: (b, 0, 0)),
            scratch_shapes=[
                pltpu.VMEM((bt, C), jnp.float32),        # running sum
                pltpu.VMEM((bt, C), jnp.float32),        # running max
                pltpu.VMEM((2 * bt, C), jnp.float32),    # fused [avg ; max]
            ],
        ),
        compiler_params=pltpu.CompilerParams(
            dimension_semantics=("parallel", "arbitrary"),
            vmem_limit_bytes=vmem_limit,
        ),
    )(x_flat, w1t, b1_row, w2t, b2_row)

    # matches `x.view(-1, input_channels, 1, 1)` in the PyTorch module
    return out.reshape(B, C, 1, 1)


def _reference(x, w1, b1, w2, b2):
    # Pure-JAX reference (sigmoid per branch, then summed — as in the module).
    avg = jnp.mean(x, axis=(2, 3))                           # (B, C)
    mx = jnp.max(x, axis=(2, 3))                             # (B, C)

    def branch(p):
        h = jnp.maximum(p @ w1.T + b1, 0.0)
        return jax.nn.sigmoid(h @ w2.T + b2)

    out = branch(avg) + branch(mx)
    return out.reshape(x.shape[0], x.shape[1], 1, 1)


if __name__ == "__main__":
    B, C, INTERNAL = 2, 4, 8

    key = jax.random.PRNGKey(0)
    kx, kx2, kw1, kb1, kw2, kb2 = jax.random.split(key, 6)

    # Conv2d(C -> INTERNAL, k=1) weight (INTERNAL, C, 1, 1) squeezed to (INTERNAL, C)
    w1 = jax.random.normal(kw1, (INTERNAL, C), dtype=jnp.float32) * 0.1
    b1 = jax.random.normal(kb1, (INTERNAL,), dtype=jnp.float32) * 0.1
    # Conv2d(INTERNAL -> C, k=1) weight (C, INTERNAL, 1, 1) squeezed to (C, INTERNAL)
    w2 = jax.random.normal(kw2, (C, INTERNAL), dtype=jnp.float32) * 0.1
    b2 = jax.random.normal(kb2, (C,), dtype=jnp.float32) * 0.1

    # 1) Auto plan: whole H*W in one step, both batch elements packed per step.
    x = jax.random.normal(kx, (B, C, 16, 16), dtype=jnp.float32)
    out = jax.block_until_ready(channel_attention(x, w1, b1, w2, b2))
    ref = _reference(x, w1, b1, w2, b2)
    assert out.shape == (B, C, 1, 1)
    assert jnp.allclose(out, ref, atol=1e-5, rtol=1e-5), "auto-plan mismatch"

    # 2) Forced multi-tile reduction with a partially valid (masked) last tile:
    #    H*W = 320 -> tiles of 128 lanes -> [128, 128, 64-valid], bt=2 packed.
    x2 = jax.random.normal(kx2, (B, C, 16, 20), dtype=jnp.float32)
    out2 = jax.block_until_ready(
        channel_attention(x2, w1, b1, w2, b2, bt=2, t_hw=128))
    ref2 = _reference(x2, w1, b1, w2, b2)
    assert jnp.allclose(out2, ref2, atol=1e-5, rtol=1e-5), "masked-tile mismatch"

    # 3) Forced bt=1 multi-tile with exact tiling (accumulator path, no mask).
    out3 = jax.block_until_ready(
        channel_attention(x, w1, b1, w2, b2, bt=1, t_hw=128))
    assert jnp.allclose(out3, ref, atol=1e-5, rtol=1e-5), "bt=1 tiled mismatch"

    print("KERNEL_OK")
</pallas_src>

<mosaic_0001>
module attributes {stable_mosaic.version = 11 : i64} {
  func.func @channel_attention_kernel(%arg0: i32, %arg1: i32, %arg2: memref<2x4x256xf32, #tpu.memory_space<vmem>>, %arg3: memref<4x8xf32, #tpu.memory_space<vmem>>, %arg4: memref<1x8xf32, #tpu.memory_space<vmem>>, %arg5: memref<8x4xf32, #tpu.memory_space<vmem>>, %arg6: memref<1x4xf32, #tpu.memory_space<vmem>>, %arg7: memref<1x2x4xf32, #tpu.memory_space<vmem>>, %arg8: memref<2x4xf32, #tpu.memory_space<vmem>>, %arg9: memref<2x4xf32, #tpu.memory_space<vmem>>, %arg10: memref<4x4xf32, #tpu.memory_space<vmem>>) attributes {dimension_semantics = [#tpu.dimension_semantics<parallel>, #tpu.dimension_semantics<arbitrary>], iteration_bounds = array<i64: 1, 1>, scalar_prefetch = 0 : i64, scratch_operands = 3 : i64, tpu.core_type = #tpu.core_type<tc>, window_params = [{transform_indices = @transform_0, window_bounds = array<i64: 2, 4, 256>}, {pipeline_mode = #tpu.pipeline_mode<synchronous>, transform_indices = @transform_1, window_bounds = array<i64: 4, 8>}, {pipeline_mode = #tpu.pipeline_mode<synchronous>, transform_indices = @transform_2, window_bounds = array<i64: 1, 8>}, {pipeline_mode = #tpu.pipeline_mode<synchronous>, transform_indices = @transform_3, window_bounds = array<i64: 8, 4>}, {pipeline_mode = #tpu.pipeline_mode<synchronous>, transform_indices = @transform_4, window_bounds = array<i64: 1, 4>}, {transform_indices = @transform_5, window_bounds = array<i64: 1, 2, 4>}]} {
    %c0 = arith.constant 0 : index
    %c0_0 = arith.constant 0 : index
    %c0_1 = arith.constant 0 : index
    %0 = vector.load %arg2[%c0, %c0_0, %c0_1] : memref<2x4x256xf32, #tpu.memory_space<vmem>>, vector<2x4x256xf32>
    %cst = arith.constant dense<0.000000e+00> : vector<2x4xf32>
    %1 = vector.multi_reduction <add>, %0, %cst [2] : vector<2x4x256xf32> to vector<2x4xf32>
    %cst_2 = arith.constant 3.906250e-03 : f32
    %2 = vector.broadcast %cst_2 : f32 to vector<2x4xf32>
    %3 = arith.mulf %1, %2 : vector<2x4xf32>
    %cst_3 = arith.constant dense<0xFF800000> : vector<2x4xf32>
    %4 = vector.multi_reduction <maximumf>, %0, %cst_3 [2] : vector<2x4x256xf32> to vector<2x4xf32>
    %c0_4 = arith.constant 0 : index
    %c0_5 = arith.constant 0 : index
    %5 = vector.load %arg10[%c0_4, %c0_5] : memref<4x4xf32, #tpu.memory_space<vmem>>, vector<2x4xf32>
    tpu.vector_store %arg10[%c0_4, %c0_5], %3 {strides = array<i32>} : memref<4x4xf32, #tpu.memory_space<vmem>>, vector<2x4xf32>,
    %c2 = arith.constant 2 : index
    %c0_6 = arith.constant 0 : index
    %6 = vector.load %arg10[%c2, %c0_6] : memref<4x4xf32, #tpu.memory_space<vmem>>, vector<2x4xf32>
    tpu.vector_store %arg10[%c2, %c0_6], %4 {strides = array<i32>} : memref<4x4xf32, #tpu.memory_space<vmem>>, vector<2x4xf32>,
    %c0_7 = arith.constant 0 : index
    %c0_8 = arith.constant 0 : index
    %7 = vector.load %arg10[%c0_7, %c0_8] : memref<4x4xf32, #tpu.memory_space<vmem>>, vector<4x4xf32>
    %c0_9 = arith.constant 0 : index
    %c0_10 = arith.constant 0 : index
    %8 = vector.load %arg3[%c0_9, %c0_10] : memref<4x8xf32, #tpu.memory_space<vmem>>, vector<4x8xf32>
    %cst_11 = arith.constant dense<0.000000e+00> : vector<4x8xf32>
    %9 = tpu.matmul %7, %8, %cst_11 {dimension_numbers = #tpu.dot_dimension_numbers<[1], [0], [0], [1], [0, 0, 1, 1], [], []>} : vector<4x4xf32>, vector<4x8xf32>, vector<4x8xf32> -> vector<4x8xf32>
    %c0_12 = arith.constant 0 : index
    %c0_13 = arith.constant 0 : index
    %10 = vector.load %arg4[%c0_12, %c0_13] : memref<1x8xf32, #tpu.memory_space<vmem>>, vector<1x8xf32>
    %11 = vector.broadcast %10 : vector<1x8xf32> to vector<4x8xf32>
    %12 = arith.addf %9, %11 : vector<4x8xf32>
    %cst_14 = arith.constant 0.000000e+00 : f32
    %13 = vector.broadcast %cst_14 : f32 to vector<4x8xf32>
    %14 = arith.maximumf %12, %13 : vector<4x8xf32>
    %c0_15 = arith.constant 0 : index
    %c0_16 = arith.constant 0 : index
    %15 = vector.load %arg5[%c0_15, %c0_16] : memref<8x4xf32, #tpu.memory_space<vmem>>, vector<8x4xf32>
    %cst_17 = arith.constant dense<0.000000e+00> : vector<4x4xf32>
    %16 = tpu.matmul %14, %15, %cst_17 {dimension_numbers = #tpu.dot_dimension_numbers<[1], [0], [0], [1], [0, 0, 1, 1], [], []>} : vector<4x8xf32>, vector<8x4xf32>, vector<4x4xf32> -> vector<4x4xf32>
    %c0_18 = arith.constant 0 : index
    %c0_19 = arith.constant 0 : index
    %17 = vector.load %arg6[%c0_18, %c0_19] : memref<1x4xf32, #tpu.memory_space<vmem>>, vector<1x4xf32>
    %18 = vector.broadcast %17 : vector<1x4xf32> to vector<4x4xf32>
    %19 = arith.addf %16, %18 : vector<4x4xf32>
    %20 = arith.negf %19 : vector<4x4xf32>
    %21 = math.exp %20 : vector<4x4xf32>
    %cst_20 = arith.constant 1.000000e+00 : f32
    %22 = vector.broadcast %cst_20 : f32 to vector<4x4xf32>
    %23 = arith.addf %22, %21 : vector<4x4xf32>
    %24 = arith.divf %22, %23 : vector<4x4xf32>
    %25 = vector.extract_strided_slice %24 {offsets = [0, 0], sizes = [2, 4], strides = [1, 1]} : vector<4x4xf32> to vector<2x4xf32>
    %26 = vector.extract_strided_slice %24 {offsets = [2, 0], sizes = [2, 4], strides = [1, 1]} : vector<4x4xf32> to vector<2x4xf32>
    %27 = arith.addf %25, %26 : vector<2x4xf32>
    %c0_21 = arith.constant 0 : index
    %c0_22 = arith.constant 0 : index
    %c0_23 = arith.constant 0 : index
    %28 = vector.load %arg7[%c0_21, %c0_22, %c0_23] : memref<1x2x4xf32, #tpu.memory_space<vmem>>, vector<1x2x4xf32>
    %29 = vector.shape_cast %28 : vector<1x2x4xf32> to vector<2x4xf32>
    %30 = vector.shape_cast %27 : vector<2x4xf32> to vector<1x2x4xf32>
    tpu.vector_store %arg7[%c0_21, %c0_22, %c0_23], %30 {strides = array<i32>} : memref<1x2x4xf32, #tpu.memory_space<vmem>>, vector<1x2x4xf32>,
    return
  }
  func.func @transform_0(%arg0: i32, %arg1: i32) -> (i32, i32, i32) {
    %c0_i32 = arith.constant 0 : i32
    %c0_i32_0 = arith.constant 0 : i32
    return %arg0, %c0_i32, %arg1 : i32, i32, i32
  }
  func.func @transform_1(%arg0: i32, %arg1: i32) -> (i32, i32) {
    %c0_i32 = arith.constant 0 : i32
    %c0_i32_0 = arith.constant 0 : i32
    %c0_i32_1 = arith.constant 0 : i32
    return %c0_i32, %c0_i32_0 : i32, i32
  }
  func.func @transform_2(%arg0: i32, %arg1: i32) -> (i32, i32) {
    %c0_i32 = arith.constant 0 : i32
    %c0_i32_0 = arith.constant 0 : i32
    %c0_i32_1 = arith.constant 0 : i32
    return %c0_i32, %c0_i32_0 : i32, i32
  }
  func.func @transform_3(%arg0: i32, %arg1: i32) -> (i32, i32) {
    %c0_i32 = arith.constant 0 : i32
    %c0_i32_0 = arith.constant 0 : i32
    %c0_i32_1 = arith.constant 0 : i32
    return %c0_i32, %c0_i32_0 : i32, i32
  }
  func.func @transform_4(%arg0: i32, %arg1: i32) -> (i32, i32) {
    %c0_i32 = arith.constant 0 : i32
    %c0_i32_0 = arith.constant 0 : i32
    %c0_i32_1 = arith.constant 0 : i32
    return %c0_i32, %c0_i32_0 : i32, i32
  }
  func.func @transform_5(%arg0: i32, %arg1: i32) -> (i32, i32, i32) {
    %c0_i32 = arith.constant 0 : i32
    %c0_i32_0 = arith.constant 0 : i32
    %c0_i32_1 = arith.constant 0 : i32
    return %arg0, %c0_i32, %c0_i32_0 : i32, i32, i32
  }
}

</mosaic_0001>

<bundles_post_ra>
// kernel: tpu_custom_call.1
= control target key start
LH: loop header
LB: loop body
LE: loop exit
PB: predicated region body
PF: predicated region fallthrough
CT: control target
= control target key end

     0   :  { %10 = vsyncpa [#allocation6], 0  ;;  %s455_s0 = inlined_call_operand.hbm [shape: f32[2,4,256], index: 0, kind: input, shape index: {}]   ;;  %s456_s1 = inlined_call_operand.vmem [shape: f32[4,8], index: 1, kind: input, shape index: {}]   ;;  %s457_s2 = inlined_call_operand.vmem [shape: f32[1,8], index: 2, kind: input, shape index: {}]   ;;  %s458_s3 = inlined_call_operand.vmem [shape: f32[8,4], index: 3, kind: input, shape index: {}]   ;;  %s459_s4 = inlined_call_operand.vmem [shape: f32[1,4], index: 4, kind: input, shape index: {}]   ;;  %s460_s5 = inlined_call_operand.hbm [shape: f32[1,2,4], index: 5, kind: output, shape index: {}]  }
   0x1   :  { %11 = vsyncpa [#allocation7], 0  ;;  %s371_s18 = smov [#allocation5]   ;;  %s323_s22 = scalar_lea.hbm %s455_s0, 256 }
   0x2   :  { %s17_s19 = sshll.u32 %s371_s18, 4  ;;  %p324_p0 = scmp.ne.s32.totalorder %s455_s0, %s323_s22  ;;  %s18_s19 = int_to_ptr.vmem [resolvable:$true] %s17_s19 }
   0x3   :  { %p327_p1 = scmp.lt.u32.totalorder %s323_s22, %s455_s0 }
   0x5   :  { %p329_p2 = pnand %p327_p1, %p324_p0 }
   0x7   :  { %332 = shalt.err (!%p329_p2)
}
   0x8   :  { %s333_s27 = scalar_lea.vmem %s18_s19, 256  ;;  %p338_p4 = scmp.lt.s32.totalorder %s18_s19, %s18_s19 }
   0x9   :  { %p334_p3 = scmp.ne.s32.totalorder %s18_s19, %s333_s27  ;;  %p339_p5 = scmp.lt.s32.totalorder %s333_s27, %s333_s27 }
   0xb   :  { %p340_p6 = por %p339_p5, %p338_p4 }
   0xd   :  { %p341_p7 = pnand %p340_p6, %p334_p3 }
   0xf   :  { %344 = shalt.err (!%p341_p7)
}
  0x10   :  { %s372_s28 = smov 128   ;;  %s373_s29 = smov 8  }
  0x11   :  { %23 = dma.hbm_to_vmem [thread:$0]  %s455_s0, 256, %s18_s19, [#allocation6], %s372_s28, %s372_s28, %s373_s29  }
  0x12   :  { %367 = dma.done.wait [#allocation6], 256  }
  0x13   :  { %368 = vsyncadd [#allocation6], 4294967040  ;;  %vm43_vm0 = vcmask 1043456   ;;  %v35_v0 = vld [vmem:[#allocation5] sm:$0xff]  ;;  %v36_v1 = vld [vmem:[#allocation5 + $0x8] sm:$0xff]  ;;  %v374_v17 = vmov 0.0   ;;  %v68_v18 = vlaneseq }
  0x14   :  { %v39_v2 = vcombine.high %v35_v0, %v35_v0  ;;  %v56_v3 = vsel %vm43_vm0, %v35_v0, -inf  ;;  %v44_v4 = vsel %vm43_vm0, %v35_v0, 0.0  ;;  %v40_v5 = vcombine.high %v36_v1, %v36_v1  ;;  %v97_v16 = vld [vmem:[%s456_s1] sm:$0xf]  ;;  %301 = vmatprep.subr.mxu0 %v374_v17  ;;  %306 = vmatprep.subr.mxu1 %v374_v17 }
  0x15   :  { %v61_v6 = vsel %vm43_vm0, %v36_v1, -inf  ;;  %v49_v7 = vsel %vm43_vm0, %v36_v1, 0.0  ;;  %vm375_vm1 = vmmov 0   ;;  %302 = vmatpush3.msk.msra.mxu0 %vm43_vm0, %v97_v16  ;;  %v69_v19 = vand.u32 127, %v68_v18  ;;  %v183_v35 = vld [vmem:[%s458_s3] sm:$0xff] }
  0x16   :  { %v57_v8 = vsel %vm43_vm0, %v39_v2, -inf  ;;  %v45_v9 = vsel %vm43_vm0, %v39_v2, 0.0  ;;  %v62_v10 = vsel %vm43_vm0, %v40_v5, -inf  ;;  %v50_v11 = vsel %vm43_vm0, %v40_v5, 0.0  ;;  %303 = vmatprep.mubr.msk.f32.mxu0 %vm375_vm1, %v374_v17  ;;  %308 = vmatprep.mubr.msk.f32.mxu1 %vm375_vm1, %v374_v17  ;;  %v291_v36 = vld [vmem:[%s457_s2] ss:$0 sm:$0xff] }
  0x17   :  { %v58_v12 = vmax.f32 %v56_v3, %v57_v8  ;;  %v46_v13 = vadd.f32 %v45_v9, %v44_v4  ;;  %v63_v14 = vmax.f32 %v61_v6, %v62_v10  ;;  %v51_v15 = vadd.f32 %v50_v11, %v49_v7  ;;  %307 = vmatpush3.msra.mxu1 %v183_v35  ;;  %v294_v41 = vld [vmem:[%s459_s4] ss:$0 sm:$0xff]  ;;  %s376_s2 = smov [#allocation8]  }
  0x18   :  { %v71_v20 = vshrl.u32 %v68_v18, 7  ;;  %vm78_vm2 = vcmask 1041409   ;;  %vm81_vm3 = vcmask 25600   ;;  %vm105_vm4 = vcmask 31744   ;;  %s282_s3 = sshll.u32 %s376_s2, 4  ;;  %s283_s3 = int_to_ptr.vmem [resolvable:$true] %s282_s3 }
  0x19   :  { %59 = vmax.xlane.f32.xlu1 %v58_v12  ;;  %47 = vadd.xlane.f32.xlu0 %v46_v13  ;;  %vm191_vm5 = vcmask 64512   ;;  %s345_s13 = scalar_lea.vmem %s283_s3, 32  ;;  %p350_p9 = scmp.lt.s32.totalorder %s283_s3, %s283_s3 }
  0x1a   :  { %v72_v23 = vsub.s32 %v69_v19, %v71_v20  ;;  %p346_p8 = scmp.ne.s32.totalorder %s283_s3, %s345_s13  ;;  %p351_p10 = scmp.lt.s32.totalorder %s345_s13, %s345_s13 }
  0x1c   :  { %p352_p11 = por %p351_p10, %p350_p9 }
  0x1d   :  { %64 = vmax.xlane.f32.xlu1 %v63_v14  ;;  %52 = vadd.xlane.f32.xlu0 %v51_v15 }
  0x1e   :  { %p353_p12 = pnand %p352_p11, %p346_p8 }
  0xa6   :  { %v60_v21 = vpop.xlane.xlu1 %59  ;;  %v48_v22 = vpop.xlane.xlu0 %47 }
  0xa7   :  { %v54_v24 = vmul.f32 0.00390625, %v48_v22  ;;  %v88_v27 = vrot.slane %v60_v21, %v72_v23 }
  0xa9   :  { %v73_v30 = vrot.slane %v54_v24, %v72_v23 }
  0xaa   :  { %v65_v25 = vpop.xlane.xlu1 %64  ;;  %v53_v26 = vpop.xlane.xlu0 %52 }
  0xab   :  { %v92_v28 = vrot.slane %v65_v25, %v72_v23  ;;  %v55_v29 = vmul.f32 0.00390625, %v53_v26 }
  0xad   :  { %v93_v31 = vsel %vm78_vm2, %v92_v28, %v88_v27  ;;  %v77_v32 = vrot.slane %v55_v29, %v72_v23 }
  0xae   :  { %95 = vst.msk [vmem:[#allocation4 + $0x2] sm:$0x3] %vm81_vm3, %v93_v31 }
  0xaf   :  { %v79_v33 = vsel %vm78_vm2, %v77_v32, %v73_v30 }
  0xb0   :  { %82 = vst.msk [vmem:[#allocation4] sm:$0x3] %vm81_vm3, %v79_v33 }
  0xb7   :  { %v96_v34 = vld [vmem:[#allocation4] sm:$0xf] }
  0xb8   :  { %304 = vmatmul.mubr.msk.f32.vlgmr.msra.gmra.mrb[0].mxu0 %vm105_vm4, %v96_v34 }
 0x18b   :  { %v178_v37 = vpop.f32.mrb[0].mxu0 }
 0x18c   :  { %v179_v38 = vadd.f32 %v291_v36, %v178_v37  ;;  %v305_v39 = vpop.f32.mrb[1].mxu0 }
 0x18e   :  { %v182_v40 = vmax.f32 %v179_v38, 0.0 }
 0x190   :  { %309 = vmatmul.mubr.msk.f32.vlgmr.msra.gmra.mrb[0].mxu1 %vm191_vm5, %v182_v40 }
 0x263   :  { %v261_v42 = vpop.f32.mrb[0].mxu1 }
 0x264   :  { %v262_v43 = vadd.f32 %v294_v41, %v261_v42  ;;  %v310_v44 = vpop.f32.mrb[1].mxu1 }
 0x266   :  { %v296_v45 = vmul.f32 -1.442695, %v262_v43 }
 0x268   :  { %319 = vpow2.f32 %v296_v45 }
 0x272   :  { %v320_v46 = vpop.eup %319 }
 0x273   :  { %v268_v47 = vadd.f32 1.0, %v320_v46 }
 0x275   :  { %321 = vrcp.f32 %v268_v47 }
 0x27f   :  { %v322_v48 = vpop.eup %321 }
 0x280   :  { %v272_v49 = vrot.slane %v322_v48, 2 }
 0x282   :  { %v274_v50 = vadd.f32 %v322_v48, %v272_v49 }
 0x284   :  { %275 = vst.msk [vmem:[#allocation8] sm:$0x3] %vm81_vm3, %v274_v50 }
 0x285   :  { %356 = shalt.err (!%p353_p12)
}
 0x286   :  { %s357_s15 = scalar_lea.hbm %s460_s5, 32 }
 0x287   :  { %p358_p13 = scmp.ne.s32.totalorder %s460_s5, %s357_s15  ;;  %p361_p0 = scmp.lt.u32.totalorder %s357_s15, %s460_s5 }
 0x289   :  { %p363_p1 = pnand %p361_p0, %p358_p13 }
 0x28b   :  { %366 = shalt.err (!%p363_p1)
}
 0x28c   :  { %285 = dma.vmem_to_hbm [thread:$0]  %s283_s3, 32, %s460_s5, [#allocation7]  }
 0x28d   :  { %369 = dma.done.wait [#allocation7], 32  }
 0x28e   :  { %370 = vsyncadd [#allocation7], 4294967264 }
 0x28f   :  { %289 = vsyncpa [#allocation6], 1 }
 0x290   :  { %290 = vsyncpa [#allocation7], 1 }

</bundles_post_ra>
